<compile_context>
chip_gen: v7x
topology: tpu7x:2x2x1
jax: 0.10.0
libtpu: 0.0.40
codegen_flags: <defaults>
</compile_context>

<pallas_src>
from functools import partial

import jax
import jax.numpy as jnp
from jax.experimental import pallas as pl
from jax.experimental.pallas import tpu as pltpu


# -----------------------------------------------------------------------------
# Kernel
# -----------------------------------------------------------------------------
def _autoencoder_kernel(x_ref,
                        w1_ref, b1_ref,
                        w2_ref, b2_ref,
                        w3_ref, b3_ref,
                        w4_ref, b4_ref,
                        xinv_ref, y_ref):
    # MXU operand dtype (bf16 on the fast path, f32 for the exactness check).
    cdt = w1_ref.dtype
    # In-kernel cast: x arrives as f32 from HBM; the cast is VPU work hidden
    # under the matmuls (no extra HBM pass in the wrapper).
    x = x_ref[...].astype(cdt)

    # ---- encoder ----
    # dot: cdt x cdt -> f32 accumulation.  Bias add / ReLU / tanh stay in f32.
    h1 = jnp.dot(x, w1_ref[...], preferred_element_type=jnp.float32) + b1_ref[...]
    h1 = jnp.maximum(h1, 0.0)                                     # ReLU (f32, VPU)
    y = jnp.dot(h1.astype(cdt), w2_ref[...],
                preferred_element_type=jnp.float32) + b2_ref[...]
    y = jnp.tanh(y)                                               # Tanh (f32, EUP)

    # ---- decoder ----
    h2 = jnp.dot(y.astype(cdt), w3_ref[...],
                 preferred_element_type=jnp.float32) + b3_ref[...]
    h2 = jnp.maximum(h2, 0.0)                                     # ReLU (f32, VPU)
    xinv = jnp.dot(h2.astype(cdt), w4_ref[...],
                   preferred_element_type=jnp.float32) + b4_ref[...]

    y_ref[...] = y.astype(y_ref.dtype)
    xinv_ref[...] = xinv.astype(xinv_ref.dtype)


# -----------------------------------------------------------------------------
# Wrapper
# -----------------------------------------------------------------------------
def _choose_tile(batch, block_batch):
    """Largest batch tile that is a multiple of 8 sublanes and <= batch
    (no forced multi-step split: it only adds grid-step overhead on the
    single-TensorCore v5e/v6e and is not needed for correctness anywhere)."""
    if batch < 8:
        return batch                 # full-dim block is exempt from the 8 rule
    tb = min(block_batch, batch)
    return max(8, (tb // 8) * 8)


def prepare_params(params, compute_dtype=jnp.bfloat16):
    """One-time prep (hoisted out of the per-call path): transpose weights to
    (in, out) and cast them to the MXU operand dtype; biases stay f32 rows."""
    return {
        "w1": jnp.asarray(params["w1"]).T.astype(compute_dtype),  # (nin,  nhid)
        "w2": jnp.asarray(params["w2"]).T.astype(compute_dtype),  # (nhid, nenc)
        "w3": jnp.asarray(params["w3"]).T.astype(compute_dtype),  # (nenc, nhid)
        "w4": jnp.asarray(params["w4"]).T.astype(compute_dtype),  # (nhid, nin)
        "b1": jnp.asarray(params["b1"]).reshape(1, -1).astype(jnp.float32),
        "b2": jnp.asarray(params["b2"]).reshape(1, -1).astype(jnp.float32),
        "b3": jnp.asarray(params["b3"]).reshape(1, -1).astype(jnp.float32),
        "b4": jnp.asarray(params["b4"]).reshape(1, -1).astype(jnp.float32),
    }


def _resident_spec(shape):
    """Grid-invariant operand (weights/biases): same block every step, single
    buffered — no point double-buffering data that never changes."""
    return pl.BlockSpec(shape, lambda i: (0, 0), pipeline_mode=pl.Buffered(1))


def _autoencoder_pallas(x, prep, tb, out_dtype):
    B, nin = x.shape
    nhid = prep["w1"].shape[1]
    nenc = prep["w2"].shape[1]

    batch_blk = lambda i: (i, 0)

    # Advisory cost hint so XLA schedules surrounding ops around the call.
    flops = 2 * B * (nin * nhid + nhid * nenc + nenc * nhid + nhid * nin)
    out_itemsize = jnp.dtype(out_dtype).itemsize
    bytes_accessed = (
        B * nin * jnp.dtype(x.dtype).itemsize
        + sum(int(v.size) * jnp.dtype(v.dtype).itemsize for v in prep.values())
        + (B * nin + B * nenc) * out_itemsize
    )
    cost = pl.CostEstimate(flops=flops, transcendentals=B * nenc,
                           bytes_accessed=bytes_accessed)

    return pl.pallas_call(
        _autoencoder_kernel,
        out_shape=(
            jax.ShapeDtypeStruct((B, nin), out_dtype),
            jax.ShapeDtypeStruct((B, nenc), out_dtype),
        ),
        grid_spec=pltpu.PrefetchScalarGridSpec(
            num_scalar_prefetch=0,
            grid=(pl.cdiv(B, tb),),           # partial last block handled by Pallas
            in_specs=[
                pl.BlockSpec((tb, nin), batch_blk),   # x (f32, cast in-kernel)
                _resident_spec((nin, nhid)),          # w1
                _resident_spec((1, nhid)),            # b1
                _resident_spec((nhid, nenc)),         # w2
                _resident_spec((1, nenc)),            # b2
                _resident_spec((nenc, nhid)),         # w3
                _resident_spec((1, nhid)),            # b3
                _resident_spec((nhid, nin)),          # w4
                _resident_spec((1, nin)),             # b4
            ],
            out_specs=[
                pl.BlockSpec((tb, nin), batch_blk),   # xinv (lane-dense)
                pl.BlockSpec((tb, nenc), batch_blk),  # y (nenc<128 -> masked store; intentional)
            ],
        ),
        compiler_params=pltpu.CompilerParams(
            dimension_semantics=("parallel",),
        ),
        cost_estimate=cost,
    )(x, prep["w1"], prep["b1"], prep["w2"], prep["b2"],
      prep["w3"], prep["b3"], prep["w4"], prep["b4"])


@partial(jax.jit, static_argnames=("block_batch", "out_dtype"))
def autoencoder_forward(x, prep, *, block_batch=2048, out_dtype=jnp.float32):
    """Autoencoder forward pass as a single Pallas kernel.

    x: (B, nin) float32
    prep: output of prepare_params (pre-transposed / pre-cast weights).
    returns (xinv, y) with shapes (B, nin), (B, nenc) in `out_dtype`.
    """
    B, _ = x.shape
    tb = _choose_tile(B, block_batch)
    return _autoencoder_pallas(x, prep, tb, out_dtype)


# -----------------------------------------------------------------------------
# Init + references
# -----------------------------------------------------------------------------
def init_params(key, nin, nenc):
    """Deterministic init mimicking nn.Linear default U[-1/sqrt(fan_in), +1/sqrt(fan_in)]."""
    nhid = 2 * nenc
    shapes = {
        "w1": (nhid, nin), "b1": (nhid,),
        "w2": (nenc, nhid), "b2": (nenc,),
        "w3": (nhid, nenc), "b3": (nhid,),
        "w4": (nin, nhid), "b4": (nin,),
    }
    fan_in = {
        "w1": nin, "b1": nin,
        "w2": nhid, "b2": nhid,
        "w3": nenc, "b3": nenc,
        "w4": nhid, "b4": nhid,
    }
    params = {}
    keys = jax.random.split(key, len(shapes))
    for k, (name, shp) in zip(keys, sorted(shapes.items())):
        bound = 1.0 / jnp.sqrt(fan_in[name])
        params[name] = jax.random.uniform(
            k, shp, dtype=jnp.float32, minval=-bound, maxval=bound)
    return params


def reference_forward(x, p):
    """Pure-JAX f32 reference matching PyTorch semantics."""
    h1 = jnp.maximum(x @ p["w1"].T + p["b1"], 0.0)
    y = jnp.tanh(h1 @ p["w2"].T + p["b2"])
    h2 = jnp.maximum(y @ p["w3"].T + p["b3"], 0.0)
    xinv = h2 @ p["w4"].T + p["b4"]
    return xinv, y


def reference_forward_emulated(x, p, compute_dtype):
    """Pure-JAX reference mimicking the kernel's operand dtype (bf16 matmuls,
    f32 accumulation/activations) so the fast path can be checked tightly."""
    cdt = compute_dtype
    f32 = jnp.float32
    h1 = jnp.maximum(
        jnp.dot(x.astype(cdt), p["w1"].T.astype(cdt), preferred_element_type=f32)
        + p["b1"], 0.0)
    y = jnp.tanh(
        jnp.dot(h1.astype(cdt), p["w2"].T.astype(cdt), preferred_element_type=f32)
        + p["b2"])
    h2 = jnp.maximum(
        jnp.dot(y.astype(cdt), p["w3"].T.astype(cdt), preferred_element_type=f32)
        + p["b3"], 0.0)
    xinv = (jnp.dot(h2.astype(cdt), p["w4"].T.astype(cdt), preferred_element_type=f32)
            + p["b4"])
    return xinv, y


# -----------------------------------------------------------------------------
# Demo / correctness check
# -----------------------------------------------------------------------------
if __name__ == "__main__":
    nin, nenc, batch = 128, 32, 16

    key = jax.random.PRNGKey(0)
    kx, kp = jax.random.split(key)
    x = jax.random.normal(kx, (batch, nin), dtype=jnp.float32)
    params = init_params(kp, nin, nenc)

    xinv_ref, y_ref = reference_forward(x, params)

    # --- exact-semantics path: f32 operands, tight tolerance ---
    prep_f32 = prepare_params(params, compute_dtype=jnp.float32)
    xinv32, y32 = autoencoder_forward(x, prep_f32)
    jax.block_until_ready((xinv32, y32))
    assert xinv32.shape == (batch, nin) and y32.shape == (batch, nenc)
    assert jnp.allclose(xinv32, xinv_ref, atol=1e-5, rtol=1e-5)
    assert jnp.allclose(y32, y_ref, atol=1e-5, rtol=1e-5)

    # --- fast path: bf16 MXU operands, f32 accumulation/activations ---
    prep_bf16 = prepare_params(params, compute_dtype=jnp.bfloat16)
    xinv16, y16 = autoencoder_forward(x, prep_bf16)
    jax.block_until_ready((xinv16, y16))
    xinv_emu, y_emu = reference_forward_emulated(x, params, jnp.bfloat16)
    assert jnp.allclose(xinv16, xinv_emu, atol=5e-3, rtol=5e-3)
    assert jnp.allclose(y16, y_emu, atol=5e-3, rtol=5e-3)
    # sanity vs. full-precision reference (bf16 operand error only)
    assert jnp.allclose(xinv16, xinv_ref, atol=5e-2, rtol=5e-2)
    assert jnp.allclose(y16, y_ref, atol=5e-2, rtol=5e-2)

    # --- ragged batch (exercises the partial last block, no wrapper pad/slice)
    #     plus the optional bf16 output stream ---
    batch_r = 20
    xr = jax.random.normal(jax.random.PRNGKey(1), (batch_r, nin), dtype=jnp.float32)
    xinv_r, y_r = autoencoder_forward(xr, prep_bf16, block_batch=16,
                                      out_dtype=jnp.bfloat16)
    jax.block_until_ready((xinv_r, y_r))
    assert xinv_r.shape == (batch_r, nin) and y_r.shape == (batch_r, nenc)
    assert xinv_r.dtype == jnp.bfloat16 and y_r.dtype == jnp.bfloat16
    xinv_r_emu, y_r_emu = reference_forward_emulated(xr, params, jnp.bfloat16)
    assert jnp.allclose(xinv_r.astype(jnp.float32), xinv_r_emu, atol=5e-2, rtol=5e-2)
    assert jnp.allclose(y_r.astype(jnp.float32), y_r_emu, atol=5e-2, rtol=5e-2)

    print("KERNEL_OK")
</pallas_src>

<mosaic_0001>
module attributes {stable_mosaic.version = 11 : i64} {
  func.func @_autoencoder_kernel(%arg0: i32, %arg1: memref<16x128xf32, #tpu.memory_space<vmem>>, %arg2: memref<128x64xf32, #tpu.memory_space<vmem>>, %arg3: memref<1x64xf32, #tpu.memory_space<vmem>>, %arg4: memref<64x32xf32, #tpu.memory_space<vmem>>, %arg5: memref<1x32xf32, #tpu.memory_space<vmem>>, %arg6: memref<32x64xf32, #tpu.memory_space<vmem>>, %arg7: memref<1x64xf32, #tpu.memory_space<vmem>>, %arg8: memref<64x128xf32, #tpu.memory_space<vmem>>, %arg9: memref<1x128xf32, #tpu.memory_space<vmem>>, %arg10: memref<16x128xf32, #tpu.memory_space<vmem>>, %arg11: memref<16x32xf32, #tpu.memory_space<vmem>>) attributes {dimension_semantics = [#tpu.dimension_semantics<parallel>], iteration_bounds = array<i64: 1>, scalar_prefetch = 0 : i64, scratch_operands = 0 : i64, tpu.core_type = #tpu.core_type<tc>, window_params = [{transform_indices = @transform_0, window_bounds = array<i64: 16, 128>}, {pipeline_mode = #tpu.pipeline_mode<synchronous>, transform_indices = @transform_1, window_bounds = array<i64: 128, 64>}, {pipeline_mode = #tpu.pipeline_mode<synchronous>, transform_indices = @transform_2, window_bounds = array<i64: 1, 64>}, {pipeline_mode = #tpu.pipeline_mode<synchronous>, transform_indices = @transform_3, window_bounds = array<i64: 64, 32>}, {pipeline_mode = #tpu.pipeline_mode<synchronous>, transform_indices = @transform_4, window_bounds = array<i64: 1, 32>}, {pipeline_mode = #tpu.pipeline_mode<synchronous>, transform_indices = @transform_5, window_bounds = array<i64: 32, 64>}, {pipeline_mode = #tpu.pipeline_mode<synchronous>, transform_indices = @transform_6, window_bounds = array<i64: 1, 64>}, {pipeline_mode = #tpu.pipeline_mode<synchronous>, transform_indices = @transform_7, window_bounds = array<i64: 64, 128>}, {pipeline_mode = #tpu.pipeline_mode<synchronous>, transform_indices = @transform_8, window_bounds = array<i64: 1, 128>}, {transform_indices = @transform_9, window_bounds = array<i64: 16, 128>}, {transform_indices = @transform_10, window_bounds = array<i64: 16, 32>}]} {
    %c0 = arith.constant 0 : index
    %c0_0 = arith.constant 0 : index
    %0 = vector.load %arg1[%c0, %c0_0] : memref<16x128xf32, #tpu.memory_space<vmem>>, vector<16x128xf32>
    %c0_1 = arith.constant 0 : index
    %c0_2 = arith.constant 0 : index
    %1 = vector.load %arg2[%c0_1, %c0_2] : memref<128x64xf32, #tpu.memory_space<vmem>>, vector<128x64xf32>
    %cst = arith.constant dense<0.000000e+00> : vector<16x64xf32>
    %2 = tpu.matmul %0, %1, %cst {dimension_numbers = #tpu.dot_dimension_numbers<[1], [0], [0], [1], [0, 0, 1, 1], [], []>} : vector<16x128xf32>, vector<128x64xf32>, vector<16x64xf32> -> vector<16x64xf32>
    %c0_3 = arith.constant 0 : index
    %c0_4 = arith.constant 0 : index
    %3 = vector.load %arg3[%c0_3, %c0_4] : memref<1x64xf32, #tpu.memory_space<vmem>>, vector<1x64xf32>
    %4 = vector.broadcast %3 : vector<1x64xf32> to vector<16x64xf32>
    %5 = arith.addf %2, %4 : vector<16x64xf32>
    %cst_5 = arith.constant 0.000000e+00 : f32
    %6 = vector.broadcast %cst_5 : f32 to vector<16x64xf32>
    %7 = arith.maximumf %5, %6 : vector<16x64xf32>
    %c0_6 = arith.constant 0 : index
    %c0_7 = arith.constant 0 : index
    %8 = vector.load %arg4[%c0_6, %c0_7] : memref<64x32xf32, #tpu.memory_space<vmem>>, vector<64x32xf32>
    %cst_8 = arith.constant dense<0.000000e+00> : vector<16x32xf32>
    %9 = tpu.matmul %7, %8, %cst_8 {dimension_numbers = #tpu.dot_dimension_numbers<[1], [0], [0], [1], [0, 0, 1, 1], [], []>} : vector<16x64xf32>, vector<64x32xf32>, vector<16x32xf32> -> vector<16x32xf32>
    %c0_9 = arith.constant 0 : index
    %c0_10 = arith.constant 0 : index
    %10 = vector.load %arg5[%c0_9, %c0_10] : memref<1x32xf32, #tpu.memory_space<vmem>>, vector<1x32xf32>
    %11 = vector.broadcast %10 : vector<1x32xf32> to vector<16x32xf32>
    %12 = arith.addf %9, %11 : vector<16x32xf32>
    %13 = math.tanh %12 : vector<16x32xf32>
    %c0_11 = arith.constant 0 : index
    %c0_12 = arith.constant 0 : index
    %14 = vector.load %arg6[%c0_11, %c0_12] : memref<32x64xf32, #tpu.memory_space<vmem>>, vector<32x64xf32>
    %cst_13 = arith.constant dense<0.000000e+00> : vector<16x64xf32>
    %15 = tpu.matmul %13, %14, %cst_13 {dimension_numbers = #tpu.dot_dimension_numbers<[1], [0], [0], [1], [0, 0, 1, 1], [], []>} : vector<16x32xf32>, vector<32x64xf32>, vector<16x64xf32> -> vector<16x64xf32>
    %c0_14 = arith.constant 0 : index
    %c0_15 = arith.constant 0 : index
    %16 = vector.load %arg7[%c0_14, %c0_15] : memref<1x64xf32, #tpu.memory_space<vmem>>, vector<1x64xf32>
    %17 = vector.broadcast %16 : vector<1x64xf32> to vector<16x64xf32>
    %18 = arith.addf %15, %17 : vector<16x64xf32>
    %cst_16 = arith.constant 0.000000e+00 : f32
    %19 = vector.broadcast %cst_16 : f32 to vector<16x64xf32>
    %20 = arith.maximumf %18, %19 : vector<16x64xf32>
    %c0_17 = arith.constant 0 : index
    %c0_18 = arith.constant 0 : index
    %21 = vector.load %arg8[%c0_17, %c0_18] : memref<64x128xf32, #tpu.memory_space<vmem>>, vector<64x128xf32>
    %cst_19 = arith.constant dense<0.000000e+00> : vector<16x128xf32>
    %22 = tpu.matmul %20, %21, %cst_19 {dimension_numbers = #tpu.dot_dimension_numbers<[1], [0], [0], [1], [0, 0, 1, 1], [], []>} : vector<16x64xf32>, vector<64x128xf32>, vector<16x128xf32> -> vector<16x128xf32>
    %c0_20 = arith.constant 0 : index
    %c0_21 = arith.constant 0 : index
    %23 = vector.load %arg9[%c0_20, %c0_21] : memref<1x128xf32, #tpu.memory_space<vmem>>, vector<1x128xf32>
    %24 = vector.broadcast %23 : vector<1x128xf32> to vector<16x128xf32>
    %25 = arith.addf %22, %24 : vector<16x128xf32>
    %c0_22 = arith.constant 0 : index
    %c0_23 = arith.constant 0 : index
    %26 = vector.load %arg11[%c0_22, %c0_23] : memref<16x32xf32, #tpu.memory_space<vmem>>, vector<16x32xf32>
    tpu.vector_store %arg11[%c0_22, %c0_23], %13 {strides = array<i32>} : memref<16x32xf32, #tpu.memory_space<vmem>>, vector<16x32xf32>,
    %c0_24 = arith.constant 0 : index
    %c0_25 = arith.constant 0 : index
    %27 = vector.load %arg10[%c0_24, %c0_25] : memref<16x128xf32, #tpu.memory_space<vmem>>, vector<16x128xf32>
    tpu.vector_store %arg10[%c0_24, %c0_25], %25 {strides = array<i32>} : memref<16x128xf32, #tpu.memory_space<vmem>>, vector<16x128xf32>,
    return
  }
  func.func @transform_0(%arg0: i32) -> (i32, i32) {
    %c0_i32 = arith.constant 0 : i32
    %c0_i32_0 = arith.constant 0 : i32
    return %arg0, %c0_i32 : i32, i32
  }
  func.func @transform_1(%arg0: i32) -> (i32, i32) {
    %c0_i32 = arith.constant 0 : i32
    %c0_i32_0 = arith.constant 0 : i32
    %c0_i32_1 = arith.constant 0 : i32
    return %c0_i32, %c0_i32_0 : i32, i32
  }
  func.func @transform_2(%arg0: i32) -> (i32, i32) {
    %c0_i32 = arith.constant 0 : i32
    %c0_i32_0 = arith.constant 0 : i32
    %c0_i32_1 = arith.constant 0 : i32
    return %c0_i32, %c0_i32_0 : i32, i32
  }
  func.func @transform_3(%arg0: i32) -> (i32, i32) {
    %c0_i32 = arith.constant 0 : i32
    %c0_i32_0 = arith.constant 0 : i32
    %c0_i32_1 = arith.constant 0 : i32
    return %c0_i32, %c0_i32_0 : i32, i32
  }
  func.func @transform_4(%arg0: i32) -> (i32, i32) {
    %c0_i32 = arith.constant 0 : i32
    %c0_i32_0 = arith.constant 0 : i32
    %c0_i32_1 = arith.constant 0 : i32
    return %c0_i32, %c0_i32_0 : i32, i32
  }
  func.func @transform_5(%arg0: i32) -> (i32, i32) {
    %c0_i32 = arith.constant 0 : i32
    %c0_i32_0 = arith.constant 0 : i32
    %c0_i32_1 = arith.constant 0 : i32
    return %c0_i32, %c0_i32_0 : i32, i32
  }
  func.func @transform_6(%arg0: i32) -> (i32, i32) {
    %c0_i32 = arith.constant 0 : i32
    %c0_i32_0 = arith.constant 0 : i32
    %c0_i32_1 = arith.constant 0 : i32
    return %c0_i32, %c0_i32_0 : i32, i32
  }
  func.func @transform_7(%arg0: i32) -> (i32, i32) {
    %c0_i32 = arith.constant 0 : i32
    %c0_i32_0 = arith.constant 0 : i32
    %c0_i32_1 = arith.constant 0 : i32
    return %c0_i32, %c0_i32_0 : i32, i32
  }
  func.func @transform_8(%arg0: i32) -> (i32, i32) {
    %c0_i32 = arith.constant 0 : i32
    %c0_i32_0 = arith.constant 0 : i32
    %c0_i32_1 = arith.constant 0 : i32
    return %c0_i32, %c0_i32_0 : i32, i32
  }
  func.func @transform_9(%arg0: i32) -> (i32, i32) {
    %c0_i32 = arith.constant 0 : i32
    %c0_i32_0 = arith.constant 0 : i32
    return %arg0, %c0_i32 : i32, i32
  }
  func.func @transform_10(%arg0: i32) -> (i32, i32) {
    %c0_i32 = arith.constant 0 : i32
    %c0_i32_0 = arith.constant 0 : i32
    return %arg0, %c0_i32 : i32, i32
  }
}

</mosaic_0001>

<bundles_post_ra>
// kernel: autoencoder_forward.1
= control target key start
LH: loop header
LB: loop body
LE: loop exit
PB: predicated region body
PF: predicated region fallthrough
CT: control target
= control target key end

     0   :  { %16 = vsyncpa [#allocation3], 0  ;;  %s943_s0 = inlined_call_operand.vmem [shape: f32[16,128], index: 0, kind: input, shape index: {}]   ;;  %s944_s1 = inlined_call_operand.vmem [shape: f32[128,64], index: 1, kind: input, shape index: {}]   ;;  %s945_s2 = inlined_call_operand.vmem [shape: f32[1,64], index: 2, kind: input, shape index: {}]   ;;  %s946_s3 = inlined_call_operand.vmem [shape: f32[64,32], index: 3, kind: input, shape index: {}]   ;;  %s947_s4 = inlined_call_operand.vmem [shape: f32[1,32], index: 4, kind: input, shape index: {}]   ;;  %s948_s5 = inlined_call_operand.vmem [shape: f32[32,64], index: 5, kind: input, shape index: {}]   ;;  %s949_s6 = inlined_call_operand.vmem [shape: f32[1,64], index: 6, kind: input, shape index: {}]   ;;  %s950_s7 = inlined_call_operand.vmem [shape: f32[64,128], index: 7, kind: input, shape index: {}]   ;;  %s951_s8 = inlined_call_operand.vmem [shape: f32[1,128], index: 8, kind: input, shape index: {}]   ;;  %s952_s9 = inlined_call_operand.hbm [shape: f32[16,128], index: 9, kind: output, shape index: {0}]   ;;  %s953_s10 = inlined_call_operand.hbm [shape: f32[16,32], index: 10, kind: output, shape index: {1}]  }
   0x1   :  { %v38_v0 = vld [vmem:[%s944_s1] sm:$0xff]  ;;  %v39_v1 = vld [vmem:[%s944_s1 + $0x8] sm:$0xff]  ;;  %v40_v2 = vld [vmem:[%s944_s1 + $0x10] sm:$0xff] }
   0x2   :  { %v602_v3 = vpack.c.bf16 %v39_v1, %v38_v0  ;;  %v41_v4 = vld [vmem:[%s944_s1 + $0x18] sm:$0xff]  ;;  %v42_v6 = vld [vmem:[%s944_s1 + $0x20] sm:$0xff]  ;;  %v43_v7 = vld [vmem:[%s944_s1 + $0x28] sm:$0xff] }
   0x3   :  { %v606_v5 = vpack.c.bf16 %v41_v4, %v40_v2  ;;  %v610_v8 = vpack.c.bf16 %v43_v7, %v42_v6  ;;  %v44_v9 = vld [vmem:[%s944_s1 + $0x30] sm:$0xff]  ;;  %v45_v10 = vld [vmem:[%s944_s1 + $0x38] sm:$0xff]  ;;  %v36_v11 = vld [vmem:[%s943_s0] sm:$0xff] }
   0x4   :  { %603 = vmatprep.subr.bf16.mxu0 %v602_v3  ;;  %550 = vmatprep.mubr.f32.mxu0 %v36_v11  ;;  %v138_v12 = vld [vmem:[%s946_s3] sm:$0xff]  ;;  %v139_v13 = vld [vmem:[%s946_s3 + $0x8] sm:$0xff]  ;;  %v140_v14 = vld [vmem:[%s946_s3 + $0x10] sm:$0xff] }
   0x5   :  { %605 = vmatpush3.bf16.msra.mxu0 %v602_v3  ;;  %v634_v15 = vpack.c.bf16 %v139_v13, %v138_v12  ;;  %v141_v16 = vld [vmem:[%s946_s3 + $0x18] sm:$0xff]  ;;  %v142_v18 = vld [vmem:[%s946_s3 + $0x20] sm:$0xff]  ;;  %v143_v19 = vld [vmem:[%s946_s3 + $0x28] sm:$0xff] }
   0x6   :  { %607 = vmatprep.subr.bf16.mxu0 %v606_v5  ;;  %v638_v17 = vpack.c.bf16 %v141_v16, %v140_v14 }
   0x9   :  { %609 = vmatpush3.bf16.msra.mxu0 %v606_v5 }
   0xa   :  { %17 = vsyncpa [#allocation5], 0  ;;  %611 = vmatprep.subr.bf16.mxu0 %v610_v8  ;;  %v614_v20 = vpack.c.bf16 %v45_v10, %v44_v9  ;;  %635 = vmatprep.subr.bf16.mxu1 %v634_v15  ;;  %v46_v21 = vld [vmem:[%s944_s1 + $0x40] sm:$0xff]  ;;  %v47_v22 = vld [vmem:[%s944_s1 + $0x48] sm:$0xff]  ;;  %v642_v23 = vpack.c.bf16 %v143_v19, %v142_v18  ;;  %vm153_vm0 = vcmask 523264   ;;  %vm248_vm1 = vcmask 261120  }
   0xb   :  { %637 = vmatpush3.bf16.msra.mxu1 %v634_v15  ;;  %v618_v24 = vpack.c.bf16 %v47_v22, %v46_v21  ;;  %v48_v25 = vld [vmem:[%s944_s1 + $0x50] sm:$0xff]  ;;  %v49_v26 = vld [vmem:[%s944_s1 + $0x58] sm:$0xff]  ;;  %v50_v28 = vld [vmem:[%s944_s1 + $0x60] sm:$0xff]  ;;  %s730_s26 = smov [#allocation4]  }
   0xc   :  { %639 = vmatprep.subr.bf16.mxu1 %v638_v17  ;;  %v622_v27 = vpack.c.bf16 %v49_v26, %v48_v25  ;;  %v51_v29 = vld [vmem:[%s944_s1 + $0x68] sm:$0xff]  ;;  %v52_v31 = vld [vmem:[%s944_s1 + $0x70] sm:$0xff]  ;;  %v53_v32 = vld [vmem:[%s944_s1 + $0x78] sm:$0xff]  ;;  %s449_s27 = sshll.u32 %s730_s26, 4  ;;  %s450_s27 = int_to_ptr.vmem [resolvable:$true] %s449_s27 }
   0xd   :  { %613 = vmatpush3.bf16.msra.mxu0 %v610_v8  ;;  %v626_v30 = vpack.c.bf16 %v51_v29, %v50_v28  ;;  %v630_v33 = vpack.c.bf16 %v53_v32, %v52_v31  ;;  %v37_v34 = vld [vmem:[%s943_s0 + $0x8] sm:$0xff]  ;;  %v144_v35 = vld [vmem:[%s946_s3 + $0x30] sm:$0xff]  ;;  %v145_v36 = vld [vmem:[%s946_s3 + $0x38] sm:$0xff]  ;;  %p687_p1 = scmp.lt.s32.totalorder %s450_s27, %s450_s27 }
   0xe   :  { %615 = vmatprep.subr.bf16.mxu0 %v614_v20  ;;  %v646_v37 = vpack.c.bf16 %v145_v36, %v144_v35  ;;  %v464_v38 = vld [vmem:[%s945_s2] ss:$0 sm:$0xff]  ;;  %v238_v46 = vld [vmem:[%s948_s5 + $0x8] sm:$0xff]  ;;  %v239_v47 = vld [vmem:[%s948_s5 + $0x10] sm:$0xff] }
   0xf   :  { %641 = vmatpush3.bf16.msra.mxu1 %v638_v17  ;;  %v237_v45 = vld [vmem:[%s948_s5] sm:$0xff]  ;;  %v240_v49 = vld [vmem:[%s948_s5 + $0x18] sm:$0xff]  ;;  %v333_v52 = vld [vmem:[%s950_s7 + $0x8] sm:$0xff] }
  0x10   :  { %643 = vmatprep.subr.bf16.mxu1 %v642_v23  ;;  %v650_v48 = vpack.c.bf16 %v238_v46, %v237_v45  ;;  %v654_v50 = vpack.c.bf16 %v240_v49, %v239_v47  ;;  %v332_v51 = vld [vmem:[%s950_s7] sm:$0xff]  ;;  %v334_v59 = vld [vmem:[%s950_s7 + $0x10] sm:$0xff]  ;;  %v335_v60 = vld [vmem:[%s950_s7 + $0x18] sm:$0xff] }
  0x11   :  { %617 = vmatpush3.bf16.msra.mxu0 %v614_v20  ;;  %v658_v53 = vpack.c.bf16 %v333_v52, %v332_v51  ;;  %v465_v54 = vld [vmem:[%s947_s4] ss:$0 sm:$0xff]  ;;  %v662_v63 = vpack.c.bf16 %v335_v60, %v334_v59  ;;  %v337_v1 = vld [vmem:[%s950_s7 + $0x28] sm:$0xff]  ;;  %v338_v3 = vld [vmem:[%s950_s7 + $0x30] sm:$0xff] }
  0x12   :  { %619 = vmatprep.subr.bf16.mxu0 %v618_v24  ;;  %v336_v0 = vld [vmem:[%s950_s7 + $0x20] sm:$0xff]  ;;  %v339_v4 = vld [vmem:[%s950_s7 + $0x38] sm:$0xff]  ;;  %s682_s7 = scalar_lea.vmem %s450_s27, 256 }
  0x13   :  { %645 = vmatpush3.bf16.msra.mxu1 %v642_v23  ;;  %v666_v2 = vpack.c.bf16 %v337_v1, %v336_v0  ;;  %v670_v5 = vpack.c.bf16 %v339_v4, %v338_v3  ;;  %v468_v6 = vld [vmem:[%s949_s6] ss:$0 sm:$0xff]  ;;  %p683_p0 = scmp.ne.s32.totalorder %s450_s27, %s682_s7  ;;  %p688_p2 = scmp.lt.s32.totalorder %s682_s7, %s682_s7 }
  0x14   :  { %647 = vmatprep.subr.bf16.mxu1 %v646_v37 }
  0x15   :  { %621 = vmatpush3.bf16.msra.mxu0 %v618_v24  ;;  %p689_p3 = por %p688_p2, %p687_p1 }
  0x16   :  { %623 = vmatprep.subr.bf16.mxu0 %v622_v27 }
  0x17   :  { %649 = vmatpush3.bf16.msra.mxu1 %v646_v37  ;;  %p690_p4 = pnand %p689_p3, %p683_p0 }
  0x18   :  { %651 = vmatprep.subr.bf16.mxu1 %v650_v48 }
  0x19   :  { %625 = vmatpush3.bf16.msra.mxu0 %v622_v27 }
  0x1a   :  { %627 = vmatprep.subr.bf16.mxu0 %v626_v30 }
  0x1d   :  { %629 = vmatpush3.bf16.msra.mxu0 %v626_v30 }
  0x1e   :  { %631 = vmatprep.subr.bf16.mxu0 %v630_v33 }
  0x21   :  { %633 = vmatpush3.bf16.msra.mxu0 %v630_v33 }
  0x24   :  { %551 = vmatmul.mubr.f32.vlgmr.msra.gmra.mrb[0].mxu0 %v37_v34 }
  0xf7   :  { %v552_v39 = vpop.f32.mrb[0].mxu0 }
  0xf8   :  { %v133_v40 = vadd.f32 %v552_v39, %v464_v38  ;;  %v127_v41 = vpop.f32.mrb[1].mxu0 }
  0xf9   :  { %v128_v42 = vadd.f32 %v464_v38, %v127_v41 }
  0xfa   :  { %v137_v44 = vmax.f32 %v133_v40, 0.0 }
  0xfb   :  { %v136_v43 = vmax.f32 %v128_v42, 0.0 }
  0xfd   :  { %569 = vmatprep.mubr.msk.f32.mxu1 %vm153_vm0, %v136_v43 }
  0xfe   :  { %570 = vmatmul.mubr.msk.f32.vlgmr.msra.gmra.mrb[0].mxu1 %vm153_vm0, %v137_v44 }
  0xff   :  { %653 = vmatpush3.bf16.msra.mxu1 %v650_v48 }
 0x100   :  { %655 = vmatprep.subr.bf16.mxu1 %v654_v50 }
 0x103   :  { %657 = vmatpush3.bf16.msra.mxu1 %v654_v50 }
 0x104   :  { %659 = vmatprep.subr.bf16.mxu1 %v658_v53 }
 0x1d1   :  { %v571_v55 = vpop.f32.mrb[0].mxu1 }
 0x1d2   :  { %v232_v56 = vadd.f32 %v571_v55, %v465_v54  ;;  %v226_v57 = vpop.f32.mrb[1].mxu1 }
 0x1d3   :  { %v227_v58 = vadd.f32 %v465_v54, %v226_v57 }
 0x1d4   :  { %678 = vtanh.f32 %v232_v56 }
 0x1d5   :  { %680 = vtanh.f32 %v227_v58 }
 0x1de   :  { %v679_v61 = vpop.eup %678 }
 0x1df   :  { %v681_v62 = vpop.eup %680  ;;  %429 = vst.msk [vmem:[#allocation4 + $0x8] sm:$0xff] %vm248_vm1, %v679_v61 }
 0x1e0   :  { %580 = vmatprep.mubr.msk.f32.mxu1 %vm248_vm1, %v681_v62  ;;  %428 = vst.msk [vmem:[#allocation4] sm:$0xff] %vm248_vm1, %v681_v62 }
 0x1e1   :  { %581 = vmatmul.mubr.msk.f32.vlgmr.msra.gmra.mrb[2].mxu1 %vm248_vm1, %v679_v61 }
 0x1e2   :  { %661 = vmatpush3.bf16.msra.mxu1 %v658_v53 }
 0x1e3   :  { %663 = vmatprep.subr.bf16.mxu1 %v662_v63 }
 0x1e6   :  { %665 = vmatpush3.bf16.msra.mxu1 %v662_v63 }
 0x1e7   :  { %667 = vmatprep.subr.bf16.mxu1 %v666_v2 }
 0x1ea   :  { %669 = vmatpush3.bf16.msra.mxu1 %v666_v2 }
 0x1eb   :  { %671 = vmatprep.subr.bf16.mxu1 %v670_v5 }
 0x1ee   :  { %673 = vmatpush3.bf16.msra.mxu1 %v670_v5 }
 0x2b4   :  { %v582_v7 = vpop.f32.mrb[2].mxu1 }
 0x2b5   :  { %v327_v8 = vadd.f32 %v582_v7, %v468_v6  ;;  %v321_v9 = vpop.f32.mrb[3].mxu1 }
 0x2b6   :  { %v322_v10 = vadd.f32 %v468_v6, %v321_v9 }
 0x2b7   :  { %v331_v12 = vmax.f32 %v327_v8, 0.0 }
 0x2b8   :  { %v330_v11 = vmax.f32 %v322_v10, 0.0 }
 0x2ba   :  { %599 = vmatprep.mubr.msk.f32.mxu1 %vm153_vm0, %v330_v11 }
 0x2bb   :  { %600 = vmatmul.mubr.msk.f32.vlgmr.msra.gmra.mrb[4].mxu1 %vm153_vm0, %v331_v12 }
 0x2bc   :  { %693 = shalt.err (!%p690_p4)
}
 0x2bd   :  { %s694_s28 = scalar_lea.hbm %s953_s10, 256 }
 0x2be   :  { %p695_p5 = scmp.ne.s32.totalorder %s953_s10, %s694_s28  ;;  %p698_p6 = scmp.lt.u32.totalorder %s694_s28, %s953_s10 }
 0x2c0   :  { %p700_p7 = pnand %p698_p6, %p695_p5 }
 0x2c2   :  { %703 = shalt.err (!%p700_p7)
}
 0x2c3   :  { %s731_s13 = smov 128   ;;  %s732_s14 = smov 8   ;;  %v471_v13 = vld [vmem:[%s951_s8] ss:$0 sm:$0xff] }
 0x2c4   :  { %455 = dma.vmem_to_hbm [thread:$0]  %s450_s27, 256, %s953_s10, [#allocation5], %s731_s13, %s731_s13, %s732_s14  }
 0x2c5   :  { %s733_s18 = smov [#allocation2]  }
 0x2c6   :  { %s437_s19 = sshll.u32 %s733_s18, 4  ;;  %s438_s19 = int_to_ptr.vmem [resolvable:$true] %s437_s19 }
 0x2c7   :  { %s704_s4 = scalar_lea.vmem %s438_s19, 256  ;;  %p709_p9 = scmp.lt.s32.totalorder %s438_s19, %s438_s19 }
 0x2c8   :  { %p705_p8 = scmp.ne.s32.totalorder %s438_s19, %s704_s4  ;;  %p710_p10 = scmp.lt.s32.totalorder %s704_s4, %s704_s4 }
 0x2ca   :  { %p711_p11 = por %p710_p10, %p709_p9 }
 0x2cc   :  { %p712_p12 = pnand %p711_p11, %p705_p8 }
 0x38e   :  { %v601_v14 = vpop.f32.mrb[4].mxu1 }
 0x38f   :  { %v425_v15 = vadd.f32 %v601_v14, %v471_v13  ;;  %v419_v16 = vpop.f32.mrb[5].mxu1 }
 0x390   :  { %v420_v17 = vadd.f32 %v471_v13, %v419_v16 }
 0x391   :  { %431 = vst [vmem:[#allocation2 + $0x8] sm:$0xff] %v425_v15 }
 0x392   :  { %430 = vst [vmem:[#allocation2] sm:$0xff] %v420_v17 }
 0x393   :  { %715 = shalt.err (!%p712_p12)
}
 0x394   :  { %s716_s8 = scalar_lea.hbm %s952_s9, 256 }
 0x395   :  { %p717_p13 = scmp.ne.s32.totalorder %s952_s9, %s716_s8  ;;  %p720_p0 = scmp.lt.u32.totalorder %s716_s8, %s952_s9 }
 0x397   :  { %p722_p1 = pnand %p720_p0, %p717_p13 }
 0x399   :  { %725 = shalt.err (!%p722_p1)
}
 0x39a   :  { %443 = dma.vmem_to_hbm [thread:$0]  %s438_s19, 256, %s952_s9, [#allocation3], %s731_s13, %s731_s13, %s732_s14  }
 0x39b   :  { %726 = dma.done.wait [#allocation3], 256  }
 0x39c   :  { %727 = vsyncadd [#allocation3], 4294967040 }
 0x39d   :  { %728 = dma.done.wait [#allocation5], 256  }
 0x39e   :  { %729 = vsyncadd [#allocation5], 4294967040 }
 0x39f   :  { %462 = vsyncpa [#allocation3], 1 }
 0x3a0   :  { %463 = vsyncpa [#allocation5], 1 }

</bundles_post_ra>
